<compile_context>
chip_gen: v6e
topology: v6e:2x2x1
jax: 0.10.0
libtpu: 0.0.40
codegen_flags: <defaults>
</compile_context>

<pallas_src>
import functools

import jax
import jax.numpy as jnp
from jax import lax
from jax.experimental import pallas as pl
from jax.experimental.pallas import tpu as pltpu

DICT_CONSTRAINT_EQ = 0
DICT_CONSTRAINT_LE = 1


def _round_up(x, m):
    return (x + m - 1) // m * m


def _choose_tile_n(f_pad, k_pad, n_cap, itemsize, budget_bytes=20 * 1024 * 1024):
    """Largest 128-multiple tN whose (double-buffered) VMEM footprint fits the budget."""
    d_bytes = 2 * f_pad * k_pad * itemsize            # resident D (conservative x2)
    best = 128
    t = 128
    while t <= min(n_cap, 2048):
        need = (d_bytes
                + 2 * k_pad * t * itemsize            # X tile (double-buffered)
                + 2 * f_pad * t * itemsize            # S tile (double-buffered)
                + 4 * f_pad * t * 4                   # f32 matmul / residual temporaries
                + 2 * t * 4)                          # output block
        if need <= budget_bytes:
            best = t
        t += 128
    return best


def _sdl_loss_kernel(params_ref, d_ref, x_ref, s_ref, o_ref, *,
                     k_valid, dict_constr_mode):
    """One N-tile: per-column (lane) partial losses; dict term folded into tile 0."""
    lam_rec = params_ref[0]
    lam_l1 = params_ref[1]
    lam_dc = params_ref[2]
    constraint = params_ref[3]

    d = d_ref[...]                                    # [F, K]   native dtype -> MXU
    x = x_ref[...]                                    # [K, tN]  native dtype -> MXU
    s = s_ref[...].astype(jnp.float32)                # [F, tN]

    # Reconstruction residual; accumulate in f32 on the MXU.
    r = jnp.dot(d, x, preferred_element_type=jnp.float32) - s
    rec_col = jnp.sum(r * r, axis=0, keepdims=True)                         # [1, tN]

    # L1 sparsity per column (f32 accumulation).
    l1_col = jnp.sum(jnp.abs(x.astype(jnp.float32)), axis=0, keepdims=True) # [1, tN]

    o_ref[...] = lam_rec * rec_col + lam_l1 * l1_col

    # Dictionary norm constraint: depends only on (grid-invariant) D,
    # so compute it once and fold it into lane 0 of tile 0's partials.
    @pl.when(pl.program_id(0) == 0)
    def _():
        d32 = d_ref[...].astype(jnp.float32)
        col_norm = jnp.sqrt(jnp.sum(d32 * d32, axis=0, keepdims=True))      # [1, K]
        diff = col_norm - constraint
        if dict_constr_mode == DICT_CONSTRAINT_EQ:
            term = jnp.abs(diff)
        else:
            term = jnp.maximum(diff, 0.0)
        # Mask out zero-padded dictionary columns (norm 0 would otherwise add |c|).
        k_idx = lax.broadcasted_iota(jnp.int32, term.shape, 1)
        dict_loss = jnp.sum(jnp.where(k_idx < k_valid, term, 0.0))
        lane0 = lax.broadcasted_iota(jnp.int32, o_ref.shape, 1) == 0
        o_ref[...] = o_ref[...] + jnp.where(lane0, lam_dc * dict_loss, 0.0)


def sparse_dictionary_learning_loss(D, X, S, *,
                                    lambda_reconstruction,
                                    lambda_sparsity_l1,
                                    lambda_dict_constr,
                                    dict_constr_mode=DICT_CONSTRAINT_EQ,
                                    dict_constraint=1.0,
                                    max_tile_n=None):
    """Pallas equivalent of SparseDictionaryLearningLoss.forward. Returns a scalar."""
    F, K = D.shape
    K2, N = X.shape
    assert K == K2 and S.shape == (F, N)

    itemsize = max(jnp.dtype(D.dtype).itemsize, jnp.dtype(X.dtype).itemsize,
                   jnp.dtype(S.dtype).itemsize)

    f_pad = _round_up(F, 8)
    k_pad = _round_up(K, 128)
    n_cap = _round_up(N, 128)
    tile_n = _choose_tile_n(f_pad, k_pad, n_cap, itemsize)
    if max_tile_n is not None:
        tile_n = min(tile_n, _round_up(max_tile_n, 128))
    n_pad = _round_up(N, tile_n)
    num_tiles = n_pad // tile_n

    # Zero padding is numerically neutral for the reconstruction / L1 terms;
    # padded dictionary columns are masked out of the constraint term in-kernel.
    if (f_pad, k_pad) != (F, K):
        D = jnp.pad(D, ((0, f_pad - F), (0, k_pad - K)))
    if (k_pad, n_pad) != (K, N):
        X = jnp.pad(X, ((0, k_pad - K), (0, n_pad - N)))
    if (f_pad, n_pad) != (F, N):
        S = jnp.pad(S, ((0, f_pad - F), (0, n_pad - N)))

    params = jnp.array([lambda_reconstruction, lambda_sparsity_l1,
                        lambda_dict_constr, dict_constraint], dtype=jnp.float32)

    kernel = functools.partial(_sdl_loss_kernel, k_valid=K,
                               dict_constr_mode=dict_constr_mode)

    partials = pl.pallas_call(
        kernel,
        out_shape=jax.ShapeDtypeStruct((1, n_pad), jnp.float32),
        grid=(num_tiles,),
        in_specs=[
            pl.BlockSpec(memory_space=pltpu.MemorySpace.SMEM),        # hyperparams
            pl.BlockSpec((f_pad, k_pad), lambda i: (0, 0)),           # D (resident)
            pl.BlockSpec((k_pad, tile_n), lambda i: (0, i)),          # X tile
            pl.BlockSpec((f_pad, tile_n), lambda i: (0, i)),          # S tile
        ],
        out_specs=pl.BlockSpec((1, tile_n), lambda i: (0, i)),        # lane-dense partials
        compiler_params=pltpu.CompilerParams(
            dimension_semantics=("parallel",),
            vmem_limit_bytes=32 * 1024 * 1024,
        ),
    )(params, D, X, S)

    # TODO(synk): add a K grid axis with an (F, tile_n) f32 accumulator for
    # dictionaries too large to keep resident in VMEM.
    return jnp.sum(partials)


def _reference_loss(D, X, S, lam_rec, lam_l1, lam_dc, constraint, mode):
    R = D @ X - S
    rec = jnp.sum(jnp.square(jnp.linalg.norm(R, axis=-2)))
    sp = jnp.sum(jnp.abs(X))
    dn = jnp.linalg.norm(D, axis=-2)
    if mode == DICT_CONSTRAINT_EQ:
        dc = jnp.sum(jnp.abs(dn - constraint))
    else:
        dc = jnp.sum(jnp.maximum(dn - constraint, 0.0))
    return lam_rec * rec + lam_l1 * sp + lam_dc * dc


if __name__ == "__main__":
    key = jax.random.PRNGKey(0)
    kd, kx, ks = jax.random.split(key, 3)

    # Small shapes consistent with the module docstrings:
    F, K, N = 16, 32, 8          # feature size, dictionary size, data count
    D = jax.random.normal(kd, (F, K), dtype=jnp.float32)
    X = jax.random.normal(kx, (K, N), dtype=jnp.float32)
    S = jax.random.normal(ks, (F, N), dtype=jnp.float32)

    lam_rec, lam_l1, lam_dc = 1.0, 0.1, 0.5
    constraint = 1.0

    # EQ mode, single-tile path.
    loss_eq = sparse_dictionary_learning_loss(
        D, X, S,
        lambda_reconstruction=lam_rec, lambda_sparsity_l1=lam_l1,
        lambda_dict_constr=lam_dc, dict_constr_mode=DICT_CONSTRAINT_EQ,
        dict_constraint=constraint)
    loss_eq = jax.block_until_ready(loss_eq)
    ref_eq = _reference_loss(D, X, S, lam_rec, lam_l1, lam_dc, constraint,
                             DICT_CONSTRAINT_EQ)
    assert jnp.allclose(loss_eq, ref_eq, rtol=1e-4, atol=1e-4), (loss_eq, ref_eq)

    # LE mode, multi-tile (grid > 1) path with non-multiple-of-128 shapes.
    F2, K2, N2 = 24, 48, 300
    kd2, kx2, ks2 = jax.random.split(jax.random.PRNGKey(0), 3)
    D2 = jax.random.normal(kd2, (F2, K2), dtype=jnp.float32)
    X2 = jax.random.normal(kx2, (K2, N2), dtype=jnp.float32)
    S2 = jax.random.normal(ks2, (F2, N2), dtype=jnp.float32)
    loss_le = sparse_dictionary_learning_loss(
        D2, X2, S2,
        lambda_reconstruction=lam_rec, lambda_sparsity_l1=lam_l1,
        lambda_dict_constr=lam_dc, dict_constr_mode=DICT_CONSTRAINT_LE,
        dict_constraint=constraint, max_tile_n=128)
    loss_le = jax.block_until_ready(loss_le)
    ref_le = _reference_loss(D2, X2, S2, lam_rec, lam_l1, lam_dc, constraint,
                             DICT_CONSTRAINT_LE)
    assert jnp.allclose(loss_le, ref_le, rtol=1e-4, atol=1e-4), (loss_le, ref_le)

    print("KERNEL_OK")
</pallas_src>

<mosaic_0001>
module attributes {stable_mosaic.version = 11 : i64} {
  func.func @_sdl_loss_kernel(%arg0: i32, %arg1: memref<4xf32, #tpu.memory_space<smem>>, %arg2: memref<16x128xf32, #tpu.memory_space<vmem>>, %arg3: memref<128x128xf32, #tpu.memory_space<vmem>>, %arg4: memref<16x128xf32, #tpu.memory_space<vmem>>, %arg5: memref<1x128xf32, #tpu.memory_space<vmem>>) attributes {dimension_semantics = [#tpu.dimension_semantics<parallel>], iteration_bounds = array<i64: 1>, scalar_prefetch = 0 : i64, scratch_operands = 0 : i64, tpu.core_type = #tpu.core_type<tc>, window_params = [{transform_indices = @transform_0, window_bounds = array<i64: 4>}, {pipeline_mode = #tpu.pipeline_mode<synchronous>, transform_indices = @transform_1, window_bounds = array<i64: 16, 128>}, {transform_indices = @transform_2, window_bounds = array<i64: 128, 128>}, {transform_indices = @transform_3, window_bounds = array<i64: 16, 128>}, {transform_indices = @transform_4, window_bounds = array<i64: 1, 128>}]} {
    %c0 = arith.constant 0 : index
    %0 = memref.load %arg1[%c0] : memref<4xf32, #tpu.memory_space<smem>>
    %c1 = arith.constant 1 : index
    %1 = memref.load %arg1[%c1] : memref<4xf32, #tpu.memory_space<smem>>
    %c2 = arith.constant 2 : index
    %2 = memref.load %arg1[%c2] : memref<4xf32, #tpu.memory_space<smem>>
    %c3 = arith.constant 3 : index
    %3 = memref.load %arg1[%c3] : memref<4xf32, #tpu.memory_space<smem>>
    %c0_0 = arith.constant 0 : index
    %c0_1 = arith.constant 0 : index
    %4 = vector.load %arg2[%c0_0, %c0_1] : memref<16x128xf32, #tpu.memory_space<vmem>>, vector<16x128xf32>
    %c0_2 = arith.constant 0 : index
    %c0_3 = arith.constant 0 : index
    %5 = vector.load %arg3[%c0_2, %c0_3] : memref<128x128xf32, #tpu.memory_space<vmem>>, vector<128x128xf32>
    %c0_4 = arith.constant 0 : index
    %c0_5 = arith.constant 0 : index
    %6 = vector.load %arg4[%c0_4, %c0_5] : memref<16x128xf32, #tpu.memory_space<vmem>>, vector<16x128xf32>
    %cst = arith.constant dense<0.000000e+00> : vector<16x128xf32>
    %7 = tpu.matmul %4, %5, %cst {dimension_numbers = #tpu.dot_dimension_numbers<[1], [0], [0], [1], [0, 0, 1, 1], [], []>} : vector<16x128xf32>, vector<128x128xf32>, vector<16x128xf32> -> vector<16x128xf32>
    %8 = arith.subf %7, %6 : vector<16x128xf32>
    %9 = arith.mulf %8, %8 : vector<16x128xf32>
    %cst_6 = arith.constant dense<0.000000e+00> : vector<128xf32>
    %10 = vector.multi_reduction <add>, %9, %cst_6 [0] : vector<16x128xf32> to vector<128xf32>
    %11 = vector.shape_cast %10 : vector<128xf32> to vector<1x128xf32>
    %12 = math.absf %5 : vector<128x128xf32>
    %cst_7 = arith.constant dense<0.000000e+00> : vector<128xf32>
    %13 = vector.multi_reduction <add>, %12, %cst_7 [0] : vector<128x128xf32> to vector<128xf32>
    %14 = vector.shape_cast %13 : vector<128xf32> to vector<1x128xf32>
    %15 = vector.broadcast %0 : f32 to vector<1x128xf32>
    %16 = arith.mulf %15, %11 : vector<1x128xf32>
    %17 = vector.broadcast %1 : f32 to vector<1x128xf32>
    %18 = arith.mulf %17, %14 : vector<1x128xf32>
    %19 = arith.addf %16, %18 : vector<1x128xf32>
    %c0_8 = arith.constant 0 : index
    %c0_9 = arith.constant 0 : index
    %20 = vector.load %arg5[%c0_8, %c0_9] : memref<1x128xf32, #tpu.memory_space<vmem>>, vector<1x128xf32>
    tpu.vector_store %arg5[%c0_8, %c0_9], %19 {strides = array<i32>} : memref<1x128xf32, #tpu.memory_space<vmem>>, vector<1x128xf32>,
    %c0_i32 = arith.constant 0 : i32
    %21 = arith.cmpi eq, %arg0, %c0_i32 : i32
    %22 = arith.extui %21 : i1 to i32
    %c0_i32_10 = arith.constant 0 : i32
    %23 = arith.cmpi ne, %22, %c0_i32_10 : i32
    scf.if %23 {
      %c0_11 = arith.constant 0 : index
      %c0_12 = arith.constant 0 : index
      %24 = vector.load %arg2[%c0_11, %c0_12] : memref<16x128xf32, #tpu.memory_space<vmem>>, vector<16x128xf32>
      %25 = arith.mulf %24, %24 : vector<16x128xf32>
      %cst_13 = arith.constant dense<0.000000e+00> : vector<128xf32>
      %26 = vector.multi_reduction <add>, %25, %cst_13 [0] : vector<16x128xf32> to vector<128xf32>
      %27 = vector.shape_cast %26 : vector<128xf32> to vector<1x128xf32>
      %28 = math.sqrt %27 : vector<1x128xf32>
      %29 = vector.broadcast %3 : f32 to vector<1x128xf32>
      %30 = arith.subf %28, %29 : vector<1x128xf32>
      %31 = math.absf %30 : vector<1x128xf32>
      %32 = tpu.iota {dimensions = array<i32: 1>} : vector<1x128xi32>
      %c32_i32 = arith.constant 32 : i32
      %33 = vector.broadcast %c32_i32 : i32 to vector<1x128xi32>
      %34 = arith.cmpi slt, %32, %33 : vector<1x128xi32>
      %cst_14 = arith.constant 0.000000e+00 : f32
      %35 = vector.broadcast %cst_14 : f32 to vector<1x128xf32>
      %36 = arith.select %34, %31, %35 : vector<1x128xi1>, vector<1x128xf32>
      %37 = vector.shape_cast %36 : vector<1x128xf32> to vector<1x1x128xf32>
      %cst_15 = arith.constant dense<0.000000e+00> : vector<1xf32>
      %38 = vector.multi_reduction <add>, %37, %cst_15 [1, 2] : vector<1x1x128xf32> to vector<1xf32>
      %39 = vector.shape_cast %38 : vector<1xf32> to vector<1x1x1xf32>
      %40 = vector.extract %39[0, 0, 0] : f32 from vector<1x1x1xf32>
      %41 = tpu.iota {dimensions = array<i32: 1>} : vector<1x128xi32>
      %c0_i32_16 = arith.constant 0 : i32
      %42 = vector.broadcast %c0_i32_16 : i32 to vector<1x128xi32>
      %43 = arith.cmpi eq, %41, %42 : vector<1x128xi32>
      %c0_17 = arith.constant 0 : index
      %c0_18 = arith.constant 0 : index
      %44 = vector.load %arg5[%c0_17, %c0_18] : memref<1x128xf32, #tpu.memory_space<vmem>>, vector<1x128xf32>
      %45 = arith.mulf %2, %40 : f32
      %cst_19 = arith.constant 0.000000e+00 : f32
      %46 = vector.broadcast %45 : f32 to vector<1x128xf32>
      %47 = vector.broadcast %cst_19 : f32 to vector<1x128xf32>
      %48 = arith.select %43, %46, %47 : vector<1x128xi1>, vector<1x128xf32>
      %49 = arith.addf %44, %48 : vector<1x128xf32>
      %c0_20 = arith.constant 0 : index
      %c0_21 = arith.constant 0 : index
      %50 = vector.load %arg5[%c0_20, %c0_21] : memref<1x128xf32, #tpu.memory_space<vmem>>, vector<1x128xf32>
      tpu.vector_store %arg5[%c0_20, %c0_21], %49 {strides = array<i32>} : memref<1x128xf32, #tpu.memory_space<vmem>>, vector<1x128xf32>,
    } else {
    }
    return
  }
  func.func @transform_0(%arg0: i32) -> i32 {
    %c0_i32 = arith.constant 0 : i32
    %c0_i32_0 = arith.constant 0 : i32
    return %c0_i32 : i32
  }
  func.func @transform_1(%arg0: i32) -> (i32, i32) {
    %c0_i32 = arith.constant 0 : i32
    %c0_i32_0 = arith.constant 0 : i32
    %c0_i32_1 = arith.constant 0 : i32
    return %c0_i32, %c0_i32_0 : i32, i32
  }
  func.func @transform_2(%arg0: i32) -> (i32, i32) {
    %c0_i32 = arith.constant 0 : i32
    %c0_i32_0 = arith.constant 0 : i32
    return %c0_i32, %arg0 : i32, i32
  }
  func.func @transform_3(%arg0: i32) -> (i32, i32) {
    %c0_i32 = arith.constant 0 : i32
    %c0_i32_0 = arith.constant 0 : i32
    return %c0_i32, %arg0 : i32, i32
  }
  func.func @transform_4(%arg0: i32) -> (i32, i32) {
    %c0_i32 = arith.constant 0 : i32
    %c0_i32_0 = arith.constant 0 : i32
    return %c0_i32, %arg0 : i32, i32
  }
}

</mosaic_0001>

<bundles_post_ra>
// kernel: tpu_custom_call.1
= control target key start
LH: loop header
LB: loop body
LE: loop exit
PB: predicated region body
PF: predicated region fallthrough
CT: control target
= control target key end

     0   :  { %9 = vsyncpa [#allocation5], 0  ;;  %s536_s0 = inlined_call_operand.hbm [shape: f32[4], index: 0, kind: input, shape index: {}]   ;;  %s537_s1 = inlined_call_operand.hbm [shape: f32[16,128], index: 1, kind: input, shape index: {}]   ;;  %s538_s2 = inlined_call_operand.hbm [shape: f32[128,128], index: 2, kind: input, shape index: {}]   ;;  %s539_s3 = inlined_call_operand.hbm [shape: f32[16,128], index: 3, kind: input, shape index: {}]   ;;  %s540_s4 = inlined_call_operand.hbm [shape: f32[1,128], index: 4, kind: output, shape index: {}]  }
   0x1   :  { %10 = vsyncpa [#allocation3], 0 }
   0x2   :  { %11 = vsyncpa [#allocation8], 0 }
   0x3   :  { %12 = vsyncpa [#allocation4], 0  ;;  %s450_s15 = smov [#allocation7]   ;;  %s451_s17 = smov [#allocation6]  }
   0x4   :  { %s38_s16 = sshll.u32 %s450_s15, 4  ;;  %s26_s18 = sshll.u32 %s451_s17, 4  ;;  %s39_s16 = int_to_ptr.vmem [resolvable:$true] %s38_s16  ;;  %s27_s18 = int_to_ptr.vmem [resolvable:$true] %s26_s18 }
   0x5   :  { %s362_s19 = scalar_lea.vmem %s39_s16, 2048  ;;  %p367_p1 = scmp.lt.s32.totalorder %s39_s16, %s39_s16 }
   0x6   :  { %p363_p0 = scmp.ne.s32.totalorder %s39_s16, %s362_s19  ;;  %p368_p2 = scmp.lt.s32.totalorder %s362_s19, %s362_s19 }
   0x8   :  { %p369_p3 = por %p368_p2, %p367_p1 }
   0xa   :  { %p370_p4 = pnand %p369_p3, %p363_p0 }
   0xc   :  { %373 = shalt.err (!%p370_p4)
}
   0xd   :  { %s452_s20 = smov 128   ;;  %s453_s21 = smov 8  }
   0xe   :  { %44 = dma.hbm_to_vmem [thread:$0]  %s538_s2, 2048, %s39_s16, [#allocation8], %s452_s20, %s452_s20, %s453_s21  }
   0xf   :  { %s454_s24 = smov [#allocation2]   ;;  %s390_s27 = scalar_lea.vmem %s27_s18, 256 }
  0x10   :  { %20 = dma.hbm_to_smem %s536_s0, 16, %s454_s24, [#allocation5]  }
  0x11   :  { %p391_p5 = scmp.ne.s32.totalorder %s27_s18, %s390_s27  ;;  %p395_p6 = scmp.lt.s32.totalorder %s27_s18, %s27_s18 }
  0x12   :  { %p396_p7 = scmp.lt.s32.totalorder %s390_s27, %s390_s27 }
  0x14   :  { %p397_p8 = por %p396_p7, %p395_p6 }
  0x16   :  { %p398_p9 = pnand %p397_p8, %p391_p5 }
  0x18   :  { %401 = shalt.err (!%p398_p9)
}
  0x19   :  { %32 = dma.hbm_to_vmem [thread:$0]  %s537_s1, 256, %s27_s18, [#allocation3], %s452_s20, %s452_s20, %s453_s21  }
  0x1a   :  { %s455_s30 = smov [#allocation9]  }
  0x1b   :  { %s50_s5 = sshll.u32 %s455_s30, 4  ;;  %s51_s5 = int_to_ptr.vmem [resolvable:$true] %s50_s5 }
  0x1c   :  { %s410_s2 = scalar_lea.vmem %s51_s5, 256  ;;  %p415_p11 = scmp.lt.s32.totalorder %s51_s5, %s51_s5 }
  0x1d   :  { %p411_p10 = scmp.ne.s32.totalorder %s51_s5, %s410_s2  ;;  %p416_p12 = scmp.lt.s32.totalorder %s410_s2, %s410_s2 }
  0x1f   :  { %p417_p13 = por %p416_p12, %p415_p11 }
  0x21   :  { %p418_p0 = pnand %p417_p13, %p411_p10 }
  0x23   :  { %421 = shalt.err (!%p418_p0)
}
  0x24   :  { %56 = dma.hbm_to_vmem [thread:$0]  %s539_s3, 256, %s51_s5, [#allocation8], %s452_s20, %s452_s20, %s453_s21  }
  0x25   :  { %442 = dma.done.wait [#allocation5], 16  }
  0x26   :  { %443 = vsyncadd [#allocation5], 4294967280 }
  0x27   :  { %444 = dma.done.wait [#allocation3], 256  }
  0x28   :  { %445 = vsyncadd [#allocation3], 4294967040 }
  0x29   :  { %446 = dma.done.wait [#allocation8], 2304  }
  0x2a   :  { %447 = vsyncadd [#allocation8], 4294964992 }
  0x2b   :  { %69 = sfence }
  0x2c   :  { %v494_v0 = vld [vmem:[#allocation7 + $0x78] sm:$0xff]  ;;  %v496_v1 = vld [vmem:[#allocation7 + $0x70] sm:$0xff]  ;;  %v500_v2 = vld [vmem:[#allocation7 + $0x68] sm:$0xff]  ;;  %s289_s1 = sld [smem:[#allocation2 + $0x3]]  ;;  %v248_v46 = vlaneseq  ;;  %vm252_vm3 = vcmask 1040384   ;;  %s456_s11 = smov [#allocation10]  }
  0x2d   :  { %308 = vmatprep.subr.mxu0 %v494_v0  ;;  %v504_v3 = vld [vmem:[#allocation7 + $0x60] sm:$0xff]  ;;  %v508_v4 = vld [vmem:[#allocation7 + $0x58] sm:$0xff]  ;;  %v512_v5 = vld [vmem:[#allocation7 + $0x50] sm:$0xff]  ;;  %v193_v62 = vand.u32 2147483647, %v500_v2  ;;  %s287_s3 = sld [smem:[#allocation2 + $0x1]] }
  0x2e   :  { %309 = vmatpush3.msra.mxu0 %v494_v0  ;;  %v514_v6 = vld [vmem:[#allocation7 + $0x8] sm:$0xff]  ;;  %v78_v8 = vld [vmem:[#allocation7 + $0x10] sm:$0xff]  ;;  %v76_v10 = vld [vmem:[#allocation7] sm:$0xff]  ;;  %v523_v51 = vand.u32 127, %v248_v46  ;;  %v190_v58 = vand.u32 2147483647, %v512_v5 }
  0x2f   :  { %310 = vmatprep.subr.mxu0 %v496_v1  ;;  %v85_v7 = vld [vmem:[#allocation7 + $0x48] sm:$0xff]  ;;  %v181_v9 = vand.u32 2147483647, %v514_v6  ;;  %v74_v11 = vld [vmem:[#allocation6] sm:$0xff]  ;;  %v75_v12 = vld [vmem:[#allocation6 + $0x8] sm:$0xff]  ;;  %s70_s7 = sld [smem:[#allocation2]] }
  0x30   :  { %311 = vmatpush3.msra.mxu0 %v496_v1  ;;  %v182_v13 = vand.u32 2147483647, %v78_v8  ;;  %v180_v14 = vand.u32 2147483647, %v76_v10  ;;  %340 = vmatprep.mubr.f32.mxu0 %v74_v11  ;;  %v229_v15 = vmul.f32 %v74_v11, %v74_v11  ;;  %v230_v16 = vmul.f32 %v75_v12, %v75_v12  ;;  %v84_v17 = vld [vmem:[#allocation7 + $0x40] sm:$0xff]  ;;  %v79_v18 = vld [vmem:[#allocation7 + $0x18] sm:$0xff] }
  0x31   :  { %312 = vmatprep.subr.mxu0 %v500_v2  ;;  %v183_v19 = vand.u32 2147483647, %v79_v18  ;;  %v83_v22 = vld [vmem:[#allocation7 + $0x38] sm:$0xff]  ;;  %v80_v23 = vld [vmem:[#allocation7 + $0x20] sm:$0xff]  ;;  %v82_v27 = vld [vmem:[#allocation7 + $0x30] sm:$0xff]  ;;  %vm250_vm2 = vcmp.lt.s32.totalorder %v523_v51, 32 }
  0x32   :  { %313 = vmatpush3.msra.mxu0 %v500_v2  ;;  %v196_v20 = vadd.f32 %v181_v9, %v180_v14  ;;  %v231_v21 = vadd.f32 %v230_v16, %v229_v15  ;;  %v184_v24 = vand.u32 2147483647, %v80_v23  ;;  %v81_v28 = vld [vmem:[#allocation7 + $0x28] sm:$0xff]  ;;  %v186_v32 = vand.u32 2147483647, %v82_v27  ;;  %s288_s8 = sld [smem:[#allocation2 + $0x2]] }
  0x33   :  { %314 = vmatprep.subr.mxu0 %v504_v3  ;;  %v185_v29 = vand.u32 2147483647, %v81_v28  ;;  %v187_v35 = vand.u32 2147483647, %v83_v22  ;;  %v188_v38 = vand.u32 2147483647, %v84_v17  ;;  %v245_v50 = vstv %s289_s1 }
  0x34   :  { %315 = vmatpush3.msra.mxu0 %v504_v3  ;;  %v197_v25 = vadd.f32 %v196_v20, %v182_v13  ;;  %v232_v26 = vrot.slane %v231_v21, 4  ;;  %v189_v41 = vand.u32 2147483647, %v85_v7  ;;  %v191_v59 = vand.u32 2147483647, %v508_v4  ;;  %s276_s12 = sshll.u32 %s456_s11, 4  ;;  %s277_s12 = int_to_ptr.vmem [resolvable:$true] %s276_s12 }
  0x35   :  { %316 = vmatprep.subr.mxu0 %v508_v4  ;;  %v192_v60 = vand.u32 2147483647, %v504_v3  ;;  %vm263_vm4 = vcmp.eq.s32.totalorder %v523_v51, 0  ;;  %s422_s13 = scalar_lea.vmem %s277_s12, 16  ;;  %s426_s14 = scalar_lea.vmem %s277_s12, 32 }
  0x36   :  { %317 = vmatpush3.msra.mxu0 %v508_v4  ;;  %v198_v30 = vadd.f32 %v197_v25, %v183_v19  ;;  %v233_v31 = vadd.f32 %v232_v26, %v231_v21  ;;  %v92_v19 = vld [vmem:[#allocation9] sm:$0xff]  ;;  %p423_p1 = scmp.ne.s32.totalorder %s277_s12, %s422_s13  ;;  %p427_p2 = scmp.lt.s32.totalorder %s277_s12, %s277_s12 }
  0x37   :  { %318 = vmatprep.subr.mxu0 %v512_v5  ;;  %p428_p3 = scmp.lt.s32.totalorder %s426_s14, %s422_s13 }
  0x38   :  { %319 = vmatpush3.msra.mxu0 %v512_v5  ;;  %v199_v33 = vadd.f32 %v198_v30, %v184_v24  ;;  %v234_v34 = vrot.slane %v233_v31, 2 }
  0x39   :  { %320 = vmatprep.subr.mxu0 %v85_v7  ;;  %p429_p4 = por %p428_p3, %p427_p2 }
  0x3a   :  { %321 = vmatpush3.msra.mxu0 %v85_v7  ;;  %v200_v36 = vadd.f32 %v199_v33, %v185_v29  ;;  %v235_v37 = vadd.f32 %v234_v34, %v233_v31  ;;  %v217_v34 = vstv %s70_s7 }
  0x3b   :  { %322 = vmatprep.subr.mxu0 %v84_v17  ;;  %p430_p5 = pnand %p429_p4, %p423_p1 }
  0x3c   :  { %323 = vmatpush3.msra.mxu0 %v84_v17  ;;  %v201_v39 = vadd.f32 %v200_v36, %v186_v32  ;;  %v236_v40 = vrot.slane %v235_v37, 1  ;;  %v93_v17 = vld [vmem:[#allocation9 + $0x8] sm:$0xff]  ;;  %v219_v32 = vstv %s287_s3 }
  0x3d   :  { %324 = vmatprep.subr.mxu0 %v83_v22 }
  0x3e   :  { %325 = vmatpush3.msra.mxu0 %v83_v22  ;;  %v202_v42 = vadd.f32 %v201_v39, %v187_v35  ;;  %v237_v43 = vadd.f32 %v236_v40, %v235_v37 }
  0x3f   :  { %326 = vmatprep.subr.mxu0 %v82_v27 }
  0x40   :  { %327 = vmatpush3.msra.mxu0 %v82_v27  ;;  %v203_v44 = vadd.f32 %v202_v42, %v188_v38  ;;  %352 = vrsqrt.f32 %v237_v43  ;;  %vm240_vm0 = vcmp.eq.f32.partialorder %v237_v43, inf  ;;  %v243_v48 = vand.u32 2147483648, %v237_v43 }
  0x41   :  { %328 = vmatprep.subr.mxu0 %v81_v28  ;;  %vm242_vm1 = vcmp.eq.f32.partialorder %v237_v43, 0.0 }
  0x42   :  { %329 = vmatpush3.msra.mxu0 %v81_v28  ;;  %v204_v45 = vadd.f32 %v203_v44, %v189_v41 }
  0x43   :  { %330 = vmatprep.subr.mxu0 %v80_v23 }
  0x44   :  { %331 = vmatpush3.msra.mxu0 %v80_v23  ;;  %v205_v61 = vadd.f32 %v204_v45, %v190_v58 }
  0x45   :  { %332 = vmatprep.subr.mxu0 %v79_v18 }
  0x46   :  { %333 = vmatpush3.msra.mxu0 %v79_v18  ;;  %v206_v63 = vadd.f32 %v205_v61, %v191_v59 }
  0x47   :  { %334 = vmatprep.subr.mxu0 %v78_v8 }
  0x48   :  { %335 = vmatpush3.msra.mxu0 %v78_v8  ;;  %v207_v7 = vadd.f32 %v206_v63, %v192_v60  ;;  %v195_v8 = vand.u32 2147483647, %v494_v0 }
  0x49   :  { %336 = vmatprep.subr.mxu0 %v514_v6 }
  0x4a   :  { %337 = vmatpush3.msra.mxu0 %v514_v6  ;;  %v194_v6 = vand.u32 2147483647, %v496_v1  ;;  %v208_v9 = vadd.f32 %v207_v7, %v193_v62 }
  0x4b   :  { %338 = vmatprep.subr.mxu0 %v76_v10 }
  0x4c   :  { %339 = vmatpush3.msra.mxu0 %v76_v10  ;;  %v209_v10 = vadd.f32 %v208_v9, %v194_v6 }
  0x4d   :  { %341 = vmatmul.mubr.f32.vlgmr.msra.gmra.mxu0 %v75_v12  ;;  %v353_v47 = vpop.eup %352 }
  0x4e   :  { %v239_v49 = vmul.f32 %v353_v47, %v237_v43  ;;  %v210_v11 = vadd.f32 %v209_v10, %v195_v8 }
  0x50   :  { %v241_v52 = vsel %vm240_vm0, %v237_v43, %v239_v49  ;;  %v211_v3 = vrot.slane %v210_v11, 4 }
  0x51   :  { %v244_v53 = vsel %vm242_vm1, %v243_v48, %v241_v52 }
  0x52   :  { %v246_v54 = vsub.f32 %v244_v53, %v245_v50  ;;  %v212_v2 = vadd.f32 %v211_v3, %v210_v11 }
  0x54   :  { %v247_v55 = vand.u32 2147483647, %v246_v54  ;;  %v213_v0 = vrot.slane %v212_v2, 2 }
  0x56   :  { %v251_v56 = vsel %vm250_vm2, %v247_v55, 0.0  ;;  %v214_v25 = vadd.f32 %v213_v0, %v212_v2 }
  0x57   :  { %v253_v57 = vsel %vm252_vm3, %v251_v56, 0.0 }
  0x58   :  { %254 = vadd.xlane.f32.xlu0 %v253_v57  ;;  %v215_v28 = vrot.slane %v214_v25, 1 }
  0x5a   :  { %v216_v31 = vadd.f32 %v215_v28, %v214_v25 }
  0x5c   :  { %v220_v36 = vmul.f32 %v219_v32, %v216_v31 }
  0xe1   :  { %v255_v12 = vpop.xlane.xlu0 %254 }
  0xe2   :  { %v256_v13 = vrot.slane %v255_v12, 4 }
  0xe4   :  { %v257_v14 = vadd.f32 %v256_v13, %v255_v12 }
  0xe6   :  { %v258_v5 = vrot.slane %v257_v14, 2 }
  0xe8   :  { %v259_v15 = vadd.f32 %v258_v5, %v257_v14 }
  0xea   :  { %v260_v4 = vrot.slane %v259_v15, 1 }
  0xec   :  { %v261_v16 = vadd.f32 %v260_v4, %v259_v15 }
  0xee   :  { %343 = vpush %v261_v16 }
 0x10d   :  { %v342_v18 = vpop.f32.mrf.mxu0 }
 0x10e   :  { %v170_v1 = vsub.f32 %v342_v18, %v93_v17 }
 0x10f   :  { %v160_v20 = vpop.f32.mrf.mxu0 }
 0x110   :  { %v169_v21 = vsub.f32 %v160_v20, %v92_v19  ;;  %v172_v22 = vmul.f32 %v170_v1, %v170_v1 }
 0x112   :  { %v171_v23 = vmul.f32 %v169_v21, %v169_v21 }
 0x114   :  { %v173_v24 = vadd.f32 %v172_v22, %v171_v23 }
 0x116   :  { %v174_v26 = vrot.slane %v173_v24, 4 }
 0x118   :  { %v175_v27 = vadd.f32 %v174_v26, %v173_v24 }
 0x11a   :  { %v176_v29 = vrot.slane %v175_v27, 2 }
 0x11c   :  { %v177_v30 = vadd.f32 %v176_v29, %v175_v27 }
 0x11e   :  { %v178_v33 = vrot.slane %v177_v30, 1 }
 0x11f   :  { %s344_s9 = spop %343 }
 0x120   :  { %v179_v35 = vadd.f32 %v178_v33, %v177_v30  ;;  %s265_s10 = smul.f32 %s344_s9, %s288_s8 }
 0x122   :  { %v218_v37 = vmul.f32 %v217_v34, %v179_v35  ;;  %v266_v39 = vstv %s265_s10 }
 0x123   :  { %v267_v40 = vsel %vm263_vm4, %v266_v39, 0.0 }
 0x124   :  { %v221_v38 = vadd.f32 %v220_v36, %v218_v37 }
 0x126   :  { %222 = vst [vmem:[#allocation10] sm:$0x1] %v221_v38 }
 0x12d   :  { %v264_v41 = vld [vmem:[#allocation10] sm:$0x1] }
 0x12e   :  { %v268_v42 = vadd.f32 %v267_v40, %v264_v41 }
 0x130   :  { %269 = vst [vmem:[#allocation10] sm:$0x1] %v268_v42 }
 0x131   :  { %433 = shalt.err (!%p430_p5)
}
 0x132   :  { %279 = dma.vmem_to_hbm [thread:$0]  %s277_s12, 16, %s540_s4, [#allocation4]  }
 0x133   :  { %448 = dma.done.wait [#allocation4], 16  }
 0x134   :  { %449 = vsyncadd [#allocation4], 4294967280 }
 0x135   :  { %283 = vsyncpa [#allocation3], 1 }
 0x136   :  { %284 = vsyncpa [#allocation8], 1 }
 0x137   :  { %285 = vsyncpa [#allocation4], 1 }
 0x138   :  { %286 = vsyncpa [#allocation5], 1 }

</bundles_post_ra>
